<compile_context>
chip_gen: v6e
topology: v6e:2x2x1
jax: 0.10.0
libtpu: 0.0.40
codegen_flags: <defaults>
</compile_context>

<pallas_src>
import functools
import math

import jax
import jax.numpy as jnp
from jax.experimental import pallas as pl
from jax.experimental.pallas import tpu as pltpu

_LANES = 128
_SUBLANES = 8


def _rmse_partial_kernel(yhat_ref, y_ref, out_ref, *, total_rows, tile_rows,
                         tiles_per_split):
    """Accumulates sum((yhat-y)^2) of this core's row range into out_ref (1,8,128)."""
    c = pl.program_id(0)          # core / split index ("parallel")
    t = pl.program_id(1)          # reduction step within the split ("arbitrary")

    @pl.when(t == 0)
    def _():
        out_ref[...] = jnp.zeros_like(out_ref)

    # Cast happens in vregs (VPU), fully hidden under the DMA (kernel is
    # HBM-bandwidth bound).
    d = yhat_ref[...].astype(jnp.float32) - y_ref[...].astype(jnp.float32)

    # Mask rows that fall outside the real array (partial last block, or a
    # split whose assigned range is entirely past the end).  OOB block
    # contents are unspecified on TPU, so mask BEFORE accumulation.
    row0 = (c * tiles_per_split + t) * tile_rows
    rid = row0 + jax.lax.broadcasted_iota(jnp.int32, (tile_rows, _LANES), 0)
    d = jnp.where(rid < total_rows, d, 0.0)
    sq = d * d                                               # (tile_rows, 128)

    # Fold the block into the per-core (8,128) accumulator with pure vreg-wise
    # VALU adds; no cross-lane (XLU) work in the hot loop.
    folded = jnp.sum(sq.reshape(tile_rows // _SUBLANES, _SUBLANES, _LANES), axis=0)
    out_ref[0, :, :] += folded


def rmse_loss(yhat, y, *, tile_rows=4096, num_splits=2):
    """RMSE = sqrt(mean((yhat - y)**2)) for matching arbitrary-shaped inputs."""
    assert yhat.shape == y.shape, (yhat.shape, y.shape)
    n = math.prod(yhat.shape)                # true element count (static)

    # Flatten (free for contiguous arrays); keep native dtype (no astype pass).
    yhat_f = yhat.reshape(-1)
    y_f = y.reshape(-1)

    rem = n % _LANES
    if rem:
        # Rare ragged case: pad by < 128 zeros so the lane-dense reshape is
        # possible.  Both sides are padded identically -> padded squared error
        # is exactly 0; we divide by the true N below.
        pad = _LANES - rem
        yhat_f = jnp.pad(yhat_f, (0, pad))
        y_f = jnp.pad(y_f, (0, pad))

    rows = yhat_f.shape[0] // _LANES
    yhat2d = yhat_f.reshape(rows, _LANES)
    y2d = y_f.reshape(rows, _LANES)

    # Tile sizing: sublane-aligned, no bigger than one split's worth of rows.
    rows_per_split = -(-rows // num_splits)
    tr = max(_SUBLANES, min(tile_rows, -(-rows_per_split // _SUBLANES) * _SUBLANES))
    tr = (tr // _SUBLANES) * _SUBLANES
    num_tiles = -(-rows // tr)
    tiles_per_split = -(-num_tiles // num_splits)

    def in_map(c, t):
        # Clamp so a split with no remaining work never requests an
        # out-of-range block; its contribution is zeroed by the row mask.
        return (jnp.minimum(c * tiles_per_split + t, num_tiles - 1), 0)

    # VMEM budget: 2 inputs x 2 pipeline buffers x block bytes (+ slack).
    block_bytes = tr * _LANES * (yhat2d.dtype.itemsize + y2d.dtype.itemsize)
    vmem_limit = max(32 * 1024 * 1024, 2 * block_bytes + (2 << 20))

    partials = pl.pallas_call(
        functools.partial(_rmse_partial_kernel, total_rows=rows, tile_rows=tr,
                          tiles_per_split=tiles_per_split),
        out_shape=jax.ShapeDtypeStruct((num_splits, _SUBLANES, _LANES), jnp.float32),
        grid=(num_splits, tiles_per_split),
        in_specs=[
            pl.BlockSpec((tr, _LANES), in_map),
            pl.BlockSpec((tr, _LANES), in_map),
        ],
        # One VMEM-resident (8,128) partial-sum block per core; written back
        # to HBM once per split.
        out_specs=pl.BlockSpec((1, _SUBLANES, _LANES), lambda c, t: (c, 0, 0)),
        compiler_params=pltpu.CompilerParams(
            dimension_semantics=("parallel", "arbitrary"),
            vmem_limit_bytes=vmem_limit,
        ),
    )(yhat2d, y2d)

    # Tiny epilogue: cross-core / cross-lane reduce, mean, sqrt.
    total = jnp.sum(partials)
    return jnp.sqrt(total / n)


if __name__ == "__main__":
    key = jax.random.PRNGKey(0)
    ks = jax.random.split(key, 8)

    def ref_rmse(a, b):
        a32 = a.astype(jnp.float32)
        b32 = b.astype(jnp.float32)
        return jnp.sqrt(jnp.mean((a32 - b32) ** 2))

    # 1) Primary case: (2, 4, 16, 16) = 2048 elems (N % 128 == 0 -> zero-copy
    #    path; both splits active).
    yhat = jax.random.normal(ks[0], (2, 4, 16, 16), dtype=jnp.float32)
    y = jax.random.normal(ks[1], (2, 4, 16, 16), dtype=jnp.float32)
    out = jax.block_until_ready(rmse_loss(yhat, y))
    ref = ref_rmse(yhat, y)
    assert jnp.allclose(out, ref, atol=1e-5, rtol=1e-5), (out, ref)

    # 2) Ragged case: 105 elems (N % 128 != 0 -> small tail pad path).
    a = jax.random.normal(ks[2], (3, 5, 7), dtype=jnp.float32)
    b = jax.random.normal(ks[3], (3, 5, 7), dtype=jnp.float32)
    out2 = jax.block_until_ready(rmse_loss(a, b))
    ref2 = ref_rmse(a, b)
    assert jnp.allclose(out2, ref2, atol=1e-5, rtol=1e-5), (out2, ref2)

    # 3) bf16 inputs kept native through the BlockSpec; partial row block and
    #    an entirely-masked second split (rows=5 < one 8-row tile).
    c = jax.random.normal(ks[4], (2, 5, 64), dtype=jnp.bfloat16)
    d = jax.random.normal(ks[5], (2, 5, 64), dtype=jnp.bfloat16)
    out3 = jax.block_until_ready(rmse_loss(c, d))
    ref3 = ref_rmse(c, d)
    assert jnp.allclose(out3, ref3, atol=1e-3, rtol=1e-3), (out3, ref3)

    # 4) Multi-step accumulation per core (tiles_per_split > 1).
    e = jax.random.normal(ks[6], (4, 8, 128), dtype=jnp.float32)
    f = jax.random.normal(ks[7], (4, 8, 128), dtype=jnp.float32)
    out4 = jax.block_until_ready(rmse_loss(e, f, tile_rows=8))
    ref4 = ref_rmse(e, f)
    assert jnp.allclose(out4, ref4, atol=1e-5, rtol=1e-5), (out4, ref4)

    print("KERNEL_OK")
</pallas_src>

<mosaic_0001>
module attributes {stable_mosaic.version = 11 : i64} {
  func.func @_rmse_partial_kernel(%arg0: i32, %arg1: i32, %arg2: memref<8x128xf32, #tpu.memory_space<vmem>>, %arg3: memref<8x128xf32, #tpu.memory_space<vmem>>, %arg4: memref<1x8x128xf32, #tpu.memory_space<vmem>>) attributes {dimension_semantics = [#tpu.dimension_semantics<parallel>, #tpu.dimension_semantics<arbitrary>], iteration_bounds = array<i64: 2, 1>, scalar_prefetch = 0 : i64, scratch_operands = 0 : i64, tpu.core_type = #tpu.core_type<tc>, window_params = [{transform_indices = @transform_0, window_bounds = array<i64: 8, 128>}, {transform_indices = @transform_1, window_bounds = array<i64: 8, 128>}, {transform_indices = @transform_2, window_bounds = array<i64: 1, 8, 128>}]} {
    %c0_i32 = arith.constant 0 : i32
    %0 = arith.cmpi eq, %arg1, %c0_i32 : i32
    %1 = arith.extui %0 : i1 to i32
    %c0_i32_0 = arith.constant 0 : i32
    %2 = arith.cmpi ne, %1, %c0_i32_0 : i32
    scf.if %2 {
      %cst_11 = arith.constant 0.000000e+00 : f32
      %25 = vector.broadcast %cst_11 : f32 to vector<1x8x128xf32>
      %c0_12 = arith.constant 0 : index
      %c0_13 = arith.constant 0 : index
      %c0_14 = arith.constant 0 : index
      %26 = vector.load %arg4[%c0_12, %c0_13, %c0_14] : memref<1x8x128xf32, #tpu.memory_space<vmem>>, vector<1x8x128xf32>
      tpu.vector_store %arg4[%c0_12, %c0_13, %c0_14], %25 {strides = array<i32>} : memref<1x8x128xf32, #tpu.memory_space<vmem>>, vector<1x8x128xf32>,
    } else {
    }
    %c0 = arith.constant 0 : index
    %c0_1 = arith.constant 0 : index
    %3 = vector.load %arg2[%c0, %c0_1] : memref<8x128xf32, #tpu.memory_space<vmem>>, vector<8x128xf32>
    %c0_2 = arith.constant 0 : index
    %c0_3 = arith.constant 0 : index
    %4 = vector.load %arg3[%c0_2, %c0_3] : memref<8x128xf32, #tpu.memory_space<vmem>>, vector<8x128xf32>
    %5 = arith.subf %3, %4 : vector<8x128xf32>
    %c1_i32 = arith.constant 1 : i32
    %6 = arith.muli %arg0, %c1_i32 : i32
    %7 = arith.addi %6, %arg1 : i32
    %c8_i32 = arith.constant 8 : i32
    %8 = arith.muli %7, %c8_i32 : i32
    %9 = tpu.iota {dimensions = array<i32: 0>} : vector<8x128xi32>
    %10 = vector.broadcast %8 : i32 to vector<8x128xi32>
    %11 = arith.addi %10, %9 : vector<8x128xi32>
    %c16_i32 = arith.constant 16 : i32
    %12 = vector.broadcast %c16_i32 : i32 to vector<8x128xi32>
    %13 = arith.cmpi slt, %11, %12 : vector<8x128xi32>
    %cst = arith.constant 0.000000e+00 : f32
    %14 = vector.broadcast %cst : f32 to vector<8x128xf32>
    %15 = arith.select %13, %5, %14 : vector<8x128xi1>, vector<8x128xf32>
    %16 = arith.mulf %15, %15 : vector<8x128xf32>
    %17 = vector.shape_cast %16 : vector<8x128xf32> to vector<1x8x128xf32>
    %cst_4 = arith.constant dense<0.000000e+00> : vector<8x128xf32>
    %18 = vector.multi_reduction <add>, %17, %cst_4 [0] : vector<1x8x128xf32> to vector<8x128xf32>
    %c0_5 = arith.constant 0 : index
    %c0_6 = arith.constant 0 : index
    %c0_7 = arith.constant 0 : index
    %19 = vector.load %arg4[%c0_5, %c0_6, %c0_7] : memref<1x8x128xf32, #tpu.memory_space<vmem>>, vector<1x8x128xf32>
    %20 = vector.shape_cast %19 : vector<1x8x128xf32> to vector<8x128xf32>
    %21 = arith.addf %20, %18 : vector<8x128xf32>
    %c0_8 = arith.constant 0 : index
    %c0_9 = arith.constant 0 : index
    %c0_10 = arith.constant 0 : index
    %22 = vector.load %arg4[%c0_8, %c0_9, %c0_10] : memref<1x8x128xf32, #tpu.memory_space<vmem>>, vector<1x8x128xf32>
    %23 = vector.shape_cast %22 : vector<1x8x128xf32> to vector<8x128xf32>
    %24 = vector.shape_cast %21 : vector<8x128xf32> to vector<1x8x128xf32>
    tpu.vector_store %arg4[%c0_8, %c0_9, %c0_10], %24 {strides = array<i32>} : memref<1x8x128xf32, #tpu.memory_space<vmem>>, vector<1x8x128xf32>,
    return
  }
  func.func @transform_0(%arg0: i32, %arg1: i32) -> (i32, i32) {
    %c1_i32 = arith.constant 1 : i32
    %0 = arith.muli %arg0, %c1_i32 : i32
    %1 = arith.addi %0, %arg1 : i32
    %c1_i32_0 = arith.constant 1 : i32
    %2 = arith.minsi %1, %c1_i32_0 : i32
    %c0_i32 = arith.constant 0 : i32
    %c0_i32_1 = arith.constant 0 : i32
    return %2, %c0_i32 : i32, i32
  }
  func.func @transform_1(%arg0: i32, %arg1: i32) -> (i32, i32) {
    %c1_i32 = arith.constant 1 : i32
    %0 = arith.muli %arg0, %c1_i32 : i32
    %1 = arith.addi %0, %arg1 : i32
    %c1_i32_0 = arith.constant 1 : i32
    %2 = arith.minsi %1, %c1_i32_0 : i32
    %c0_i32 = arith.constant 0 : i32
    %c0_i32_1 = arith.constant 0 : i32
    return %2, %c0_i32 : i32, i32
  }
  func.func @transform_2(%arg0: i32, %arg1: i32) -> (i32, i32, i32) {
    %c0_i32 = arith.constant 0 : i32
    %c0_i32_0 = arith.constant 0 : i32
    %c0_i32_1 = arith.constant 0 : i32
    return %arg0, %c0_i32, %c0_i32_0 : i32, i32, i32
  }
}

</mosaic_0001>

<bundles_post_ra>
// kernel: tpu_custom_call.1
= control target key start
LH: loop header
LB: loop body
LE: loop exit
PB: predicated region body
PF: predicated region fallthrough
CT: control target
= control target key end

     0   :  { %s854_s0 = inlined_call_operand.hbm [shape: f32[16,128], index: 0, kind: input, shape index: {}]   ;;  %s855_s1 = inlined_call_operand.hbm [shape: f32[16,128], index: 1, kind: input, shape index: {}]   ;;  %s856_s2 = inlined_call_operand.hbm [shape: f32[2,8,128], index: 2, kind: output, shape index: {}]  }
   0x1   :  { %857 = sst [smem:[#allocation11_spill]] %s854_s0 }
   0x2   :  { %7 = vsyncpa [#allocation3], 0 }
   0x3   :  { %9 = vsyncpa [#allocation3 + $0x1], 0 }
   0x4   :  { %10 = vsyncpa [#allocation6], 0 }
   0x5   :  { %12 = vsyncpa [#allocation6 + $0x1], 0 }
   0x6   :  { %13 = vsyncpa [#allocation4], 0 }
   0x7   :  { %15 = vsyncpa [#allocation4 + $0x1], 0  ;;  %s661_s9 = smov 0   ;;  %s663_s10 = smov 0  }
   0x8   :  { %s665_s11 = smov 0   ;;  %s667_s12 = smov 0  }
   0x9   :  { %s669_s13 = smov 0   ;;  %s671_s14 = smov 0  }
   0xa   :  { %s673_s15 = smov 0   ;;  %s675_s16 = smov 0  }
   0xb   :  { %s677_s17 = smov 0  }
   0xc LB: > { %s368_s18 = sadd.s32 4294967295, %s641_s17   ;;  %s369_s19 = sadd.s32 4294967294, %s641_s17   ;;  %s641_s17 = sphi %s677_s17, %s21_s17   ;;  %s637_s16 = sphi %s675_s16, %s873_s16   ;;  %s633_s15 = sphi %s673_s15, %s872_s15   ;;  %s629_s14 = sphi %s671_s14, %s871_s14   ;;  %s625_s13 = sphi %s669_s13, %s870_s13   ;;  %s621_s12 = sphi %s667_s12, %s869_s12   ;;  %s617_s11 = sphi %s665_s11, %s868_s11   ;;  %s613_s10 = sphi %s663_s10, %s867_s10   ;;  %s609_s9 = sphi %s661_s9, %s866_s9  }
   0xd   : > { %s33_s20 = sadd.s32 1, %s637_s16  ;;  %p38_p0 = scmp.lt.s32.totalorder %s637_s16, 1 }
   0xe   : > { %p35_p1 = scmp.ge.s32.totalorder %s33_s20, 2  ;;  %s46_s21 = sadd.s32 1, %s629_s14 }
   0xf   : > { %s710_s22 = scalar_select %p38_p0, %s637_s16, 1 }
  0x10   : > { %s875_s20 = smov (%p35_p1, %s33_s20), 0  ;;  %p53_p2 = scmp.ne.s32.totalorder %s629_s14, %s625_s13 }
  0x11   : > { %p54_p3 = scmp.eq.s32.totalorder %s641_s17, 0  ;;  %p41_p4 = scmp.lt.s32.totalorder %s875_s20, 1 }
  0x12   : > { %p59_p5 = scmp.ne.s32.totalorder %s625_s13, %s621_s12  ;;  %p60_p7 = scmp.eq.s32.totalorder %s368_s18, 0 }
  0x13   : > { %p719_p6 = por %p54_p3, %p53_p2  ;;  %s101_s26 = ssub.s32 %s637_s16, %s875_s20 }
  0x14   : > { %s42_s24 = scalar_select %p41_p4, %s875_s20, 1 }
  0x15   : > { %p724_p8 = por %p60_p7, %p59_p5  ;;  %p102_p9 = scmp.eq.s32.totalorder %s101_s26, 0 }
  0x16   : > { %s43_s27 = ssub.s32 %s710_s22, %s42_s24  ;;  %s104_s28 = sadd.s32 1, %s617_s11 }
  0x17   : > { %p44_p10 = scmp.eq.s32.totalorder %s43_s27, 0  ;;  %p114_p11 = scmp.ne.s32.totalorder %s617_s11, %s613_s10 }
  0x18   : > { %s733_s29 = scalar_select %p102_p9, %s617_s11, %s104_s28  }
  0x19   : > { %s736_s30 = scalar_select %p44_p10, %s629_s14, %s46_s21  }
  0x1a   : > { %p115_p12 = scmp.eq.s32.totalorder %s368_s18, 1  ;;  %p120_p13 = scmp.ne.s32.totalorder %s613_s10, %s609_s9 }
  0x1b   : > { %p121_p0 = scmp.eq.s32.totalorder %s369_s19, 1  ;;  %p402_p4 = scmp.lt.s32.totalorder %s641_s17, 2 }
  0x1c   : > { %p742_p1 = por %p115_p12, %p114_p11  ;;  %s753_s5 = sand.u32 1, %s629_s14  }
  0x1d   : > { %p747_p3 = por %p121_p0, %p120_p13  ;;  %s373_s6 = sshll.u32 %s710_s22, 7 }
  0x1e   : > { %s372_s7 = sshll.u32 %s753_s5, 3  ;;  %s862_s0 = sld [smem:[#allocation11_spill]] }
  0x1f   : > { %s145_s19 = scalar_lea.vmem [#allocation2], %s372_s7  ;;  %p762_p5 = pnand %p402_p4, %p719_p6 }
  0x20   : > { %s155_s21 = sshll.u32 %s145_s19, 4  ;;  %p376_p7 = scmp.ge.s32.totalorder %s641_s17, 1  ;;  %s156_s21 = int_to_ptr.vmem [resolvable:$true] %s155_s21 }
  0x21   : > { %p181_p9 = scmp.lt.s32.totalorder %s641_s17, 3  ;;  %s142_s26 = scalar_lea.sflag [#allocation3], %s753_s5 }
  0x22   : > { %p479_p10 = pneg %p762_p5  ;;  %s490_s22 = scalar_lea.vmem %s156_s21, 128 }
  0x23   : > { %p491_p11 = scmp.ne.s32.totalorder %s156_s21, %s490_s22  ;;  %s643_s27 = smov [#allocation2]  }
  0x24   : > { %s153_s18 = scalar_lea.hbm %s862_s0, %s373_s6  ;;  %s495_s23 = sshll.u32 %s643_s27, 4  ;;  %s496_s23 = int_to_ptr.vmem [resolvable:$false] %s495_s23 }
  0x25   : > { %p493_p12 = pnand %p491_p11, %p479_p10  ;;  %s497_s28 = scalar_lea.vmem %s496_s23, 256 }
  0x26   : > { %p498_p6 = scmp.lt.s32.totalorder %s156_s21, %s496_s23  ;;  %p499_p0 = scmp.lt.s32.totalorder %s497_s28, %s490_s22 }
  0x27   : > { %p494_p13 = pneg %p493_p12 }
  0x28   : > { %p500_p4 = por %p499_p0, %p498_p6 }
  0x2a   : > { %p501_p2 = pnand %p500_p4, %p494_p13 }
  0x2c   : > { %504 = shalt.err (!%p501_p2)
}
  0x2d   : > { %394 = dma.hbm_to_vmem [thread:$0]  (!%p762_p5), %s153_s18, 128, %s156_s21, %s142_s26  }
  0x2e   : > { %p780_p11 = pnand %p376_p7, %p181_p9  ;;  %s174_s22 = scalar_lea.hbm %s855_s1, %s373_s6 }
  0x2f   : > { %s166_s27 = scalar_lea.vmem [#allocation5], %s372_s7  ;;  %s163_s28 = scalar_lea.sflag [#allocation6], %s753_s5 }
  0x30   : > { %s176_s23 = sshll.u32 %s166_s27, 4  ;;  %s644_s18 = smov [#allocation5]   ;;  %s177_s23 = int_to_ptr.vmem [resolvable:$true] %s176_s23 }
  0x31   : > { %s518_s0 = scalar_lea.vmem %s177_s23, 128  ;;  %s523_s21 = sshll.u32 %s644_s18, 4  ;;  %s524_s21 = int_to_ptr.vmem [resolvable:$false] %s523_s21 }
  0x32   : > { %p519_p2 = scmp.ne.s32.totalorder %s177_s23, %s518_s0  ;;  %s525_s26 = scalar_lea.vmem %s524_s21, 256 }
  0x33   : > { %p526_p7 = scmp.lt.s32.totalorder %s177_s23, %s524_s21  ;;  %p527_p9 = scmp.lt.s32.totalorder %s525_s26, %s518_s0 }
  0x34   : > { %p521_p12 = pnand %p519_p2, %p479_p10 }
  0x35   : > { %p528_p6 = por %p527_p9, %p526_p7 }
  0x36   : > { %p522_p13 = pneg %p521_p12 }
  0x38   : > { %p529_p0 = pnand %p528_p6, %p522_p13 }
  0x3a   : > { %532 = shalt.err (!%p529_p0)
}
  0x3b   : > { %397 = dma.hbm_to_vmem [thread:$0]  (!%p762_p5), %s174_s22, 128, %s177_s23, %s163_s28  }
  0x3c   : > { %185 = sbr.rel (%p780_p11) target bundleno = 93 (0x5d), region = 28  ;;  %s187_s5 = sand.u32 (!%p780_p11), 1, %s625_s13  }
  0x3d   : > { %s377_s6 = sshll.u32 (!%p780_p11), %s187_s5, 3  ;;  %s188_s7 = scalar_lea.sflag (!%p780_p11), [#allocation3], %s187_s5 }
  0x3e   : > { %s191_s12 = scalar_lea.vmem (!%p780_p11), [#allocation2], %s377_s6 }
  0x41   : > { %596 = dma.done.wait (%p724_p8), %s188_s7, 128  }
  0x42   : > { %598 = vsyncadd (%p724_p8), %s188_s7, 4294967168  ;;  %s197_s0 = scalar_lea.sflag [#allocation6], %s187_s5  ;;  %s200_s19 = scalar_lea.vmem [#allocation5], %s377_s6 }
  0x43   : > { %600 = dma.done.wait (%p724_p8), %s197_s0, 128  }
  0x44   : > { %602 = vsyncadd (%p724_p8), %s197_s0, 4294967168  ;;  %s380_s24 = sshll.u32 %s633_s15, 3  ;;  %v242_v0 = vlaneseq  ;;  %s223_s8 = sand.u32 1, %s613_s10   ;;  %v237_v4 = vld [vmem:[%s191_s12] sm:$0xff]  ;;  %v238_v5 = vld [vmem:[%s200_s19] sm:$0xff] }
  0x45   : > { %v244_v1 = vstv %s380_s24  ;;  %s379_s22 = sshll.u32 %s223_s8, 3  ;;  %v239_v6 = vsub.f32 %v237_v4, %v238_v5  ;;  %s382_s27 = sshll.u32 %s633_s15, 7 }
  0x46   : > { %v243_v2 = vshrl.u32 %v242_v0, 7  ;;  %s225_s23 = scalar_lea.vmem [#allocation7], %s379_s22  ;;  %s265_s21 = scalar_lea.hbm %s856_s2, %s382_s27 }
  0x47   : > { %s267_s25 = sshll.u32 %s225_s23, 4  ;;  %s254_s26 = scalar_lea.sflag [#allocation4], %s223_s8  ;;  %s268_s25 = int_to_ptr.vmem [resolvable:$true] %s267_s25 }
  0x48   : > { %v245_v3 = vadd.s32 %v244_v1, %v243_v2  ;;  %s533_s5 = scalar_lea.vmem %s268_s25, 128  ;;  %s645_s6 = smov [#allocation7]  }
  0x49   : > { %p534_p8 = scmp.ne.s32.totalorder %s268_s25, %s533_s5  ;;  %s537_s7 = sshll.u32 %s645_s6, 4  ;;  %s538_s7 = int_to_ptr.vmem [resolvable:$false] %s537_s7 }
  0x4a   : > { %vm246_vm0 = vcmp.lt.s32.totalorder %v245_v3, 16  ;;  %s539_s12 = scalar_lea.vmem %s538_s7, 256  ;;  %p540_p4 = scmp.lt.s32.totalorder %s268_s25, %s538_s7 }
  0x4b   : > { %v247_v7 = vsel %vm246_vm0, %v239_v6, 0.0  ;;  %p535_p5 = pnand %p534_p8, %p742_p1  ;;  %p541_p11 = scmp.lt.s32.totalorder %s539_s12, %s533_s5 }
  0x4c   : > { %v248_v8 = vmul.f32 %v247_v7, %v247_v7 }
  0x4d   : > { %p536_p10 = pneg %p535_p5  ;;  %p542_p2 = por %p541_p11, %p540_p4 }
  0x4e   : > { %252 = vst [vmem:[%s225_s23] sm:$0xff] %v248_v8 }
  0x4f   : > { %p543_p12 = pnand %p542_p2, %p536_p10 }
  0x51   : > { %546 = shalt.err (!%p543_p12)
}
  0x52   : > { %s547_s15 = scalar_lea.hbm %s265_s21, 128  ;;  %s551_s24 = scalar_lea.hbm %s856_s2, 256 }
  0x53   : > { %p548_p13 = scmp.ne.s32.totalorder %s265_s21, %s547_s15  ;;  %p552_p6 = scmp.lt.s32.totalorder %s265_s21, %s856_s2 }
  0x54   : > { %p553_p0 = scmp.lt.s32.totalorder %s551_s24, %s547_s15 }
  0x55   : > { %p549_p7 = pnand %p548_p13, %p742_p1 }
  0x56   : > { %p554_p8 = por %p553_p0, %p552_p6 }
  0x57   : > { %p550_p9 = pneg %p549_p7 }
  0x59   : > { %p555_p5 = pnand %p554_p8, %p550_p9 }
  0x5b   : > { %558 = shalt.err (!%p555_p5)
}
  0x5c   : > { %389 = dma.vmem_to_hbm [thread:$0]  (%p742_p1), %s268_s25, 128, %s265_s21, %s254_s26  }
  0x5d PF: > { %s279_s27 = sand.u32 1, %s609_s9   ;;  %p865_p10 = scmp.ge.s32.totalorder %s641_s17, 2 }
  0x5e   : > { %s280_s23 = scalar_lea.sflag [#allocation4], %s279_s27 }
  0x5f   : > { %p399_p4 = pnand %p865_p10, %p747_p3 }
  0x61   : > { %p400_p11 = pneg %p399_p4 }
  0x63   : > { %604 = dma.done.wait (%p400_p11), %s280_s23, 128  }
  0x64   : > { %606 = vsyncadd (%p400_p11), %s280_s23, 4294967168  ;;  %s21_s17 = sadd.s32 1, %s641_s17   ;;  %s866_s9 = smov %s613_s10 }
  0x65   : > { %p18_p2 = scmp.ge.s32.totalorder %s21_s17, 4   ;;  %s867_s10 = smov %s617_s11 }
  0x66   : > { %s868_s11 = smov %s733_s29  ;;  %s869_s12 = smov %s625_s13 }
  0x67   : > { %s870_s13 = smov %s629_s14  ;;  %s871_s14 = smov %s736_s30 }
  0x68   : > { %s872_s15 = smov %s637_s16  ;;  %s873_s16 = smov %s875_s20 }
  0x69   :  { %20 = sbr.rel (!%p18_p2) target bundleno = 12 (0xc), region = 90 }
  0x6e   :  { %285 = vsyncpa [#allocation3], 1 }
  0x6f   :  { %287 = vsyncpa [#allocation3 + $0x1], 1 }
  0x70   :  { %288 = vsyncpa [#allocation6], 1 }
  0x71   :  { %290 = vsyncpa [#allocation6 + $0x1], 1 }
  0x72   :  { %291 = vsyncpa [#allocation4], 1 }
  0x73   :  { %293 = vsyncpa [#allocation4 + $0x1], 1 }

</bundles_post_ra>
